<compile_context>
chip_gen: v5e
topology: v5e:2x2
jax: 0.10.0
libtpu: 0.0.40
codegen_flags: <defaults>
</compile_context>

<pallas_src>
from functools import partial

import jax
import jax.numpy as jnp
from jax.experimental import pallas as pl
from jax.experimental.pallas import tpu as pltpu

K = 5  # r3 conv kernel size


def fused_predict_kernel(x_ref, w_col_ref, conv_b_ref,
                         sent_ref, s1w_ref, s1b_ref, s2w_ref, s2b_ref,
                         l1w_ref, l1b_ref, l2w_ref, l2b_ref,
                         l3w_ref, l3b_ref,
                         out_ref, *, B, Lout):
    """Conv1d(k=5)+ReLU+global-maxpool fused with the MLP head.

    x_ref     : (B*Lout, K*C)  im2col windows of the review input (row b*Lout+t)
    w_col_ref : (K*C, 256)     conv weight reshaped for im2col
    conv_b_ref: (1, 256)
    sent_ref  : (B, 4*max_sentences)
    s1w/s1b   : (4*max_sent, rh1) / (1, rh1)
    s2w, l2w  : (1, rh1) / (1, ch1) row vectors  (mul + lane-reduce)
    l1w/l1b   : (256, ch1) / (1, ch1)
    s2b,l2b,l3w,l3b : SMEM scalars of shape (1,), (1,), (2,), (1,)
    out_ref   : (B, 2) -- column 0 = final output, column 1 = r
    """
    # --- review branch: Conv1d + bias + ReLU + global max-pool ---------------
    # One MXU matmul for the whole batch: (B*Lout, K*C) @ (K*C, 256).
    conv = jnp.dot(x_ref[...], w_col_ref[...], preferred_element_type=jnp.float32)
    conv = jnp.maximum(conv + conv_b_ref[...], 0.0)                    # (B*Lout, 256)

    # Per-batch global max-pool over the length axis (static sublane slices,
    # B is tiny and static), assembled into a (B, 256) feature tile.
    feat = jnp.concatenate(
        [jnp.max(conv[b * Lout:(b + 1) * Lout, :], axis=0, keepdims=True)
         for b in range(B)],
        axis=0)                                                         # (B, 256)

    # --- sentiment branch: r = s2(s1(sentiment_flat)) -------------------------
    rh = jnp.dot(sent_ref[...], s1w_ref[...],
                 preferred_element_type=jnp.float32) + s1b_ref[...]     # (B, rh1)
    r = jnp.sum(rh * s2w_ref[...], axis=1, keepdims=True) + s2b_ref[0]  # (B, 1)

    # --- head: out = l2(relu(dropout(l1(feat)))) ------------------------------
    # TODO(synk): nn.Dropout(p=0.5) treated as identity (eval-mode semantics).
    h = jnp.dot(feat, l1w_ref[...],
                preferred_element_type=jnp.float32) + l1b_ref[...]      # (B, ch1)
    h = jnp.maximum(h, 0.0)
    o = jnp.sum(h * l2w_ref[...], axis=1, keepdims=True) + l2b_ref[0]   # (B, 1)

    # --- l3(cat([out, r], dim=1)) = out*W[0] + r*W[1] + b ----------------------
    final = o * l3w_ref[0] + r * l3w_ref[1] + l3b_ref[0]                # (B, 1)

    # single lane-contiguous (B, 2) write: [:, 0] = final, [:, 1] = r
    col_ids = jax.lax.broadcasted_iota(jnp.int32, (B, 2), 1)
    out_ref[...] = jnp.where(col_ids == 0, final, r)


def predict_forward(paper_ncl, review_ncl, sentiment, weights):
    # The p3 branch over `paper` never reaches the returned values -> skipped.
    del paper_ncl

    B, C, L = review_ncl.shape
    Lout = L - K + 1

    # NCL -> NLC (channels-last), im2col, and flatten batch*length (wrapper
    # side, tiny XLA work).  Row b*Lout + t holds window t of batch element b.
    review_nlc = jnp.transpose(review_ncl, (0, 2, 1))                     # (B, L, C)
    x_col = jnp.concatenate(
        [review_nlc[:, k:k + Lout, :] for k in range(K)], axis=-1)        # (B, Lout, K*C)
    x2d = x_col.reshape(B * Lout, K * C)                                  # (B*Lout, K*C)
    w_col = weights["r3_w"].reshape(K * C, -1)                            # (K*C, 256)
    sent_flat = sentiment.reshape(B, -1)

    vmem = pl.BlockSpec(memory_space=pltpu.MemorySpace.VMEM)
    smem = pl.BlockSpec(memory_space=pltpu.MemorySpace.SMEM)

    fused = pl.pallas_call(
        partial(fused_predict_kernel, B=B, Lout=Lout),
        out_shape=jax.ShapeDtypeStruct((B, 2), jnp.float32),
        in_specs=[vmem, vmem, vmem,                  # x2d, w_col, conv_b
                  vmem, vmem, vmem, vmem, smem,      # sent, s1w, s1b, s2w, s2b
                  vmem, vmem, vmem, smem,            # l1w, l1b, l2w, l2b
                  smem, smem],                       # l3w, l3b
        out_specs=vmem,
    )(x2d, w_col, weights["r3_b"],
      sent_flat, weights["s1_w"], weights["s1_b"], weights["s2_w"], weights["s2_b"],
      weights["l1_w"], weights["l1_b"], weights["l2_w"], weights["l2_b"],
      weights["l3_w"], weights["l3_b"])

    output = fused[:, 0:1]
    r = fused[:, 1:2]
    return output, r


def init_weights(key, in_channels, rh1, ch1, max_sentences):
    keys = jax.random.split(key, 12)
    scale = 0.05
    # p3 conv params omitted: the reference forward never uses out_p3 in its
    # returned values, so that branch (and its parameters) are dropped.
    return {
        # conv weight as (K, C_in, C_out); bias as (1, C_out)
        "r3_w": scale * jax.random.normal(keys[0], (K, in_channels, 256), jnp.float32),
        "r3_b": scale * jax.random.normal(keys[1], (1, 256), jnp.float32),
        # linear weights stored as (in, out); biases as (1, out)
        "s1_w": scale * jax.random.normal(keys[2], (4 * max_sentences, rh1), jnp.float32),
        "s1_b": scale * jax.random.normal(keys[3], (1, rh1), jnp.float32),
        # out_features==1 layers stored as (1, in) row vectors; biases as SMEM scalars
        "s2_w": scale * jax.random.normal(keys[4], (1, rh1), jnp.float32),
        "s2_b": scale * jax.random.normal(keys[5], (1,), jnp.float32),
        "l1_w": scale * jax.random.normal(keys[6], (256, ch1), jnp.float32),
        "l1_b": scale * jax.random.normal(keys[7], (1, ch1), jnp.float32),
        "l2_w": scale * jax.random.normal(keys[8], (1, ch1), jnp.float32),
        "l2_b": scale * jax.random.normal(keys[9], (1,), jnp.float32),
        # l3: index 0 multiplies the l2 output, index 1 multiplies r (cat order [out, r])
        "l3_w": scale * jax.random.normal(keys[10], (2,), jnp.float32),
        "l3_b": scale * jax.random.normal(keys[11], (1,), jnp.float32),
    }


if __name__ == "__main__":
    # Small shapes consistent with the module:
    #   in_channels=4, rh1=8, ch1=16, max_sentences=8
    B, C, L, RH1, CH1, MAX_SENT = 2, 4, 16, 8, 16, 8

    key = jax.random.PRNGKey(0)
    k_in, k_w = jax.random.split(key)
    k1, k2, k3 = jax.random.split(k_in, 3)

    paper = jax.random.normal(k1, (B, C, L), jnp.float32)             # NCL, like PyTorch
    review = jax.random.normal(k2, (B, C, L), jnp.float32)            # NCL
    sentiment = jax.random.normal(k3, (B, MAX_SENT, 4), jnp.float32)  # flattens to 4*max_sentences

    weights = init_weights(k_w, C, RH1, CH1, MAX_SENT)

    output, r = jax.jit(predict_forward)(paper, review, sentiment, weights)
    jax.block_until_ready((output, r))

    assert output.shape == (B, 1) and r.shape == (B, 1)
    print("KERNEL_OK")
</pallas_src>

<mosaic_0001>
module attributes {stable_mosaic.version = 11 : i64} {
  func.func @fused_predict_kernel(%arg0: memref<24x20xf32, #tpu.memory_space<vmem>>, %arg1: memref<20x256xf32, #tpu.memory_space<vmem>>, %arg2: memref<1x256xf32, #tpu.memory_space<vmem>>, %arg3: memref<2x32xf32, #tpu.memory_space<vmem>>, %arg4: memref<32x8xf32, #tpu.memory_space<vmem>>, %arg5: memref<1x8xf32, #tpu.memory_space<vmem>>, %arg6: memref<1x8xf32, #tpu.memory_space<vmem>>, %arg7: memref<1xf32, #tpu.memory_space<smem>>, %arg8: memref<256x16xf32, #tpu.memory_space<vmem>>, %arg9: memref<1x16xf32, #tpu.memory_space<vmem>>, %arg10: memref<1x16xf32, #tpu.memory_space<vmem>>, %arg11: memref<1xf32, #tpu.memory_space<smem>>, %arg12: memref<2xf32, #tpu.memory_space<smem>>, %arg13: memref<1xf32, #tpu.memory_space<smem>>, %arg14: memref<2x2xf32, #tpu.memory_space<vmem>>) attributes {dimension_semantics = [], scalar_prefetch = 0 : i64, scratch_operands = 0 : i64, tpu.core_type = #tpu.core_type<tc>} {
    %c0 = arith.constant 0 : index
    %c0_0 = arith.constant 0 : index
    %0 = vector.load %arg0[%c0, %c0_0] : memref<24x20xf32, #tpu.memory_space<vmem>>, vector<24x20xf32>
    %c0_1 = arith.constant 0 : index
    %c0_2 = arith.constant 0 : index
    %1 = vector.load %arg1[%c0_1, %c0_2] : memref<20x256xf32, #tpu.memory_space<vmem>>, vector<20x256xf32>
    %cst = arith.constant dense<0.000000e+00> : vector<24x256xf32>
    %2 = tpu.matmul %0, %1, %cst {dimension_numbers = #tpu.dot_dimension_numbers<[1], [0], [0], [1], [0, 0, 1, 1], [], []>} : vector<24x20xf32>, vector<20x256xf32>, vector<24x256xf32> -> vector<24x256xf32>
    %c0_3 = arith.constant 0 : index
    %c0_4 = arith.constant 0 : index
    %3 = vector.load %arg2[%c0_3, %c0_4] : memref<1x256xf32, #tpu.memory_space<vmem>>, vector<1x256xf32>
    %4 = vector.broadcast %3 : vector<1x256xf32> to vector<24x256xf32>
    %5 = arith.addf %2, %4 : vector<24x256xf32>
    %cst_5 = arith.constant 0.000000e+00 : f32
    %6 = vector.broadcast %cst_5 : f32 to vector<24x256xf32>
    %7 = arith.maximumf %5, %6 : vector<24x256xf32>
    %8 = vector.extract_strided_slice %7 {offsets = [0, 0], sizes = [12, 256], strides = [1, 1]} : vector<24x256xf32> to vector<12x256xf32>
    %cst_6 = arith.constant dense<0xFF800000> : vector<256xf32>
    %9 = vector.multi_reduction <maximumf>, %8, %cst_6 [0] : vector<12x256xf32> to vector<256xf32>
    %10 = vector.shape_cast %9 : vector<256xf32> to vector<1x256xf32>
    %11 = vector.extract_strided_slice %7 {offsets = [12, 0], sizes = [12, 256], strides = [1, 1]} : vector<24x256xf32> to vector<12x256xf32>
    %cst_7 = arith.constant dense<0xFF800000> : vector<256xf32>
    %12 = vector.multi_reduction <maximumf>, %11, %cst_7 [0] : vector<12x256xf32> to vector<256xf32>
    %13 = vector.shape_cast %12 : vector<256xf32> to vector<1x256xf32>
    %14 = tpu.concatenate %10, %13 in 0 : vector<1x256xf32>, vector<1x256xf32> -> vector<2x256xf32>
    %c0_8 = arith.constant 0 : index
    %c0_9 = arith.constant 0 : index
    %15 = vector.load %arg3[%c0_8, %c0_9] : memref<2x32xf32, #tpu.memory_space<vmem>>, vector<2x32xf32>
    %c0_10 = arith.constant 0 : index
    %c0_11 = arith.constant 0 : index
    %16 = vector.load %arg4[%c0_10, %c0_11] : memref<32x8xf32, #tpu.memory_space<vmem>>, vector<32x8xf32>
    %cst_12 = arith.constant dense<0.000000e+00> : vector<2x8xf32>
    %17 = tpu.matmul %15, %16, %cst_12 {dimension_numbers = #tpu.dot_dimension_numbers<[1], [0], [0], [1], [0, 0, 1, 1], [], []>} : vector<2x32xf32>, vector<32x8xf32>, vector<2x8xf32> -> vector<2x8xf32>
    %c0_13 = arith.constant 0 : index
    %c0_14 = arith.constant 0 : index
    %18 = vector.load %arg5[%c0_13, %c0_14] : memref<1x8xf32, #tpu.memory_space<vmem>>, vector<1x8xf32>
    %19 = vector.broadcast %18 : vector<1x8xf32> to vector<2x8xf32>
    %20 = arith.addf %17, %19 : vector<2x8xf32>
    %c0_15 = arith.constant 0 : index
    %c0_16 = arith.constant 0 : index
    %21 = vector.load %arg6[%c0_15, %c0_16] : memref<1x8xf32, #tpu.memory_space<vmem>>, vector<1x8xf32>
    %22 = vector.broadcast %21 : vector<1x8xf32> to vector<2x8xf32>
    %23 = arith.mulf %20, %22 : vector<2x8xf32>
    %cst_17 = arith.constant dense<0.000000e+00> : vector<2xf32>
    %24 = vector.multi_reduction <add>, %23, %cst_17 [1] : vector<2x8xf32> to vector<2xf32>
    %25 = vector.shape_cast %24 : vector<2xf32> to vector<2x1xf32>
    %c0_18 = arith.constant 0 : index
    %26 = memref.load %arg7[%c0_18] : memref<1xf32, #tpu.memory_space<smem>>
    %27 = vector.broadcast %26 : f32 to vector<2x1xf32>
    %28 = arith.addf %25, %27 : vector<2x1xf32>
    %c0_19 = arith.constant 0 : index
    %c0_20 = arith.constant 0 : index
    %29 = vector.load %arg8[%c0_19, %c0_20] : memref<256x16xf32, #tpu.memory_space<vmem>>, vector<256x16xf32>
    %cst_21 = arith.constant dense<0.000000e+00> : vector<2x16xf32>
    %30 = tpu.matmul %14, %29, %cst_21 {dimension_numbers = #tpu.dot_dimension_numbers<[1], [0], [0], [1], [0, 0, 1, 1], [], []>} : vector<2x256xf32>, vector<256x16xf32>, vector<2x16xf32> -> vector<2x16xf32>
    %c0_22 = arith.constant 0 : index
    %c0_23 = arith.constant 0 : index
    %31 = vector.load %arg9[%c0_22, %c0_23] : memref<1x16xf32, #tpu.memory_space<vmem>>, vector<1x16xf32>
    %32 = vector.broadcast %31 : vector<1x16xf32> to vector<2x16xf32>
    %33 = arith.addf %30, %32 : vector<2x16xf32>
    %cst_24 = arith.constant 0.000000e+00 : f32
    %34 = vector.broadcast %cst_24 : f32 to vector<2x16xf32>
    %35 = arith.maximumf %33, %34 : vector<2x16xf32>
    %c0_25 = arith.constant 0 : index
    %c0_26 = arith.constant 0 : index
    %36 = vector.load %arg10[%c0_25, %c0_26] : memref<1x16xf32, #tpu.memory_space<vmem>>, vector<1x16xf32>
    %37 = vector.broadcast %36 : vector<1x16xf32> to vector<2x16xf32>
    %38 = arith.mulf %35, %37 : vector<2x16xf32>
    %cst_27 = arith.constant dense<0.000000e+00> : vector<2xf32>
    %39 = vector.multi_reduction <add>, %38, %cst_27 [1] : vector<2x16xf32> to vector<2xf32>
    %40 = vector.shape_cast %39 : vector<2xf32> to vector<2x1xf32>
    %c0_28 = arith.constant 0 : index
    %41 = memref.load %arg11[%c0_28] : memref<1xf32, #tpu.memory_space<smem>>
    %42 = vector.broadcast %41 : f32 to vector<2x1xf32>
    %43 = arith.addf %40, %42 : vector<2x1xf32>
    %c0_29 = arith.constant 0 : index
    %44 = memref.load %arg12[%c0_29] : memref<2xf32, #tpu.memory_space<smem>>
    %45 = vector.broadcast %44 : f32 to vector<2x1xf32>
    %46 = arith.mulf %43, %45 : vector<2x1xf32>
    %c1 = arith.constant 1 : index
    %47 = memref.load %arg12[%c1] : memref<2xf32, #tpu.memory_space<smem>>
    %48 = vector.broadcast %47 : f32 to vector<2x1xf32>
    %49 = arith.mulf %28, %48 : vector<2x1xf32>
    %50 = arith.addf %46, %49 : vector<2x1xf32>
    %c0_30 = arith.constant 0 : index
    %51 = memref.load %arg13[%c0_30] : memref<1xf32, #tpu.memory_space<smem>>
    %52 = vector.broadcast %51 : f32 to vector<2x1xf32>
    %53 = arith.addf %50, %52 : vector<2x1xf32>
    %54 = tpu.iota {dimensions = array<i32: 1>} : vector<2x2xi32>
    %c0_i32 = arith.constant 0 : i32
    %55 = vector.broadcast %c0_i32 : i32 to vector<2x2xi32>
    %56 = arith.cmpi eq, %54, %55 : vector<2x2xi32>
    %57 = vector.shape_cast %53 : vector<2x1xf32> to vector<2x1xf32>
    %58 = vector.broadcast %57 : vector<2x1xf32> to vector<2x2xf32>
    %59 = vector.shape_cast %28 : vector<2x1xf32> to vector<2x1xf32>
    %60 = vector.broadcast %59 : vector<2x1xf32> to vector<2x2xf32>
    %61 = arith.select %56, %58, %60 : vector<2x2xi1>, vector<2x2xf32>
    %c0_31 = arith.constant 0 : index
    %c0_32 = arith.constant 0 : index
    %62 = vector.load %arg14[%c0_31, %c0_32] : memref<2x2xf32, #tpu.memory_space<vmem>>, vector<2x2xf32>
    tpu.vector_store %arg14[%c0_31, %c0_32], %61 {strides = array<i32>} : memref<2x2xf32, #tpu.memory_space<vmem>>, vector<2x2xf32>,
    return
  }
}

</mosaic_0001>

<bundles_post_ra>
// kernel: predict_forward.1
= control target key start
LH: loop header
LB: loop body
LE: loop exit
PB: predicated region body
PF: predicated region fallthrough
CT: control target
= control target key end

     0   :  { %22 = vsyncpa [#allocation6], 0  ;;  %s373_s16 = smov [#allocation5]   ;;  %s623_s0 = inlined_call_operand.vmem [shape: f32[24,20], index: 0, kind: input, shape index: {}]   ;;  %s624_s1 = inlined_call_operand.vmem [shape: f32[20,256], index: 1, kind: input, shape index: {}]   ;;  %s625_s2 = inlined_call_operand.vmem [shape: f32[1,256], index: 2, kind: input, shape index: {}]   ;;  %s626_s3 = inlined_call_operand.vmem [shape: f32[2,32], index: 3, kind: input, shape index: {}]   ;;  %s627_s4 = inlined_call_operand.vmem [shape: f32[32,8], index: 4, kind: input, shape index: {}]   ;;  %s628_s5 = inlined_call_operand.vmem [shape: f32[1,8], index: 5, kind: input, shape index: {}]   ;;  %s629_s6 = inlined_call_operand.vmem [shape: f32[1,8], index: 6, kind: input, shape index: {}]   ;;  %s630_s7 = inlined_call_operand.<no memory space> [shape: f32[1], index: 7, kind: input, shape index: {}]   ;;  %s631_s8 = inlined_call_operand.vmem [shape: f32[256,16], index: 8, kind: input, shape index: {}]   ;;  %s632_s9 = inlined_call_operand.vmem [shape: f32[1,16], index: 9, kind: input, shape index: {}]   ;;  %s633_s10 = inlined_call_operand.vmem [shape: f32[1,16], index: 10, kind: input, shape index: {}]   ;;  %s634_s11 = inlined_call_operand.<no memory space> [shape: f32[1], index: 11, kind: input, shape index: {}]   ;;  %s635_s12 = inlined_call_operand.vmem [shape: f32[2], index: 12, kind: input, shape index: {}]   ;;  %s636_s13 = inlined_call_operand.<no memory space> [shape: f32[1], index: 13, kind: input, shape index: {}]   ;;  %s637_s14 = inlined_call_operand.vmem [shape: f32[2,2], index: 14, kind: output, shape index: {}]  }
   0x1   :  { %s52_s15 = sshll.u32 %s635_s12, 4  ;;  %s53_s15 = int_to_ptr.vmem [resolvable:$true] %s52_s15 }
   0x2   :  { %55 = dma.vmem_to_smem %s53_s15, 16, %s373_s16, [#allocation6]  }
   0x3   :  { %371 = dma.done.wait [#allocation6], 16  }
   0x4   :  { %372 = vsyncadd [#allocation6], 4294967280 }
   0x5   :  { %62 = sfence }
   0x6   :  { %v70_v0 = vld [vmem:[%s624_s1 + $0x20] sm:$0xf]  ;;  %vm88_vm0 = vcmask 1043456   ;;  %v71_v1 = vld [vmem:[%s624_s1 + $0x28] sm:$0xf]  ;;  %v68_v2 = vld [vmem:[%s624_s1 + $0x10] sm:$0xff] }
   0x7   :  { %344 = vmatpush.msk.msra.mxu2 %vm88_vm0, %v70_v0  ;;  %348 = vmatpush.msk.msra.mxu1 %vm88_vm0, %v71_v1  ;;  %v69_v3 = vld [vmem:[%s624_s1 + $0x18] sm:$0xff]  ;;  %v66_v4 = vld [vmem:[%s624_s1] sm:$0xff]  ;;  %v67_v5 = vld [vmem:[%s624_s1 + $0x8] sm:$0xff]  ;;  %vm78_vm1 = vcmask 162816   ;;  %vm198_vm2 = vcmask 261120   ;;  %vm169_vm3 = vcmask 1047556  }
   0x8   :  { %v63_v6 = vld [vmem:[%s623_s0] sm:$0xff]  ;;  %v64_v7 = vld [vmem:[%s623_s0 + $0x8] sm:$0xff]  ;;  %v65_v8 = vld [vmem:[%s623_s0 + $0x10] sm:$0xff]  ;;  %vm186_vm4 = vcmask 1040384   ;;  %vm227_vm5 = vcmask 58368   ;;  %vm316_vm6 = vcmask 123904  }
   0x9   :  { %109 = vmatpush.msra.mxu2 %v68_v2  ;;  %135 = vmatpush.msra.mxu1 %v69_v3  ;;  %v265_v9 = vld [vmem:[%s631_s8 + $0xf8] sm:$0xff]  ;;  %v264_v10 = vld [vmem:[%s631_s8 + $0xf0] sm:$0xff]  ;;  %v263_v11 = vld [vmem:[%s631_s8 + $0xe8] sm:$0xff]  ;;  %s323_s20 = sld [smem:[#allocation5]]  ;;  %vm337_vm8 = vcmask 9216  }
   0xa   :  { %290 = vmatpush.msra.mxu0 %v265_v9  ;;  %v249_v12 = vld [vmem:[%s631_s8 + $0x78] sm:$0xff]  ;;  %v262_v13 = vld [vmem:[%s631_s8 + $0xe0] sm:$0xff]  ;;  %v248_v14 = vld [vmem:[%s631_s8 + $0x70] sm:$0xff] }
   0xb   :  { %110 = vmatpush.msra.mxu2 %v66_v4  ;;  %136 = vmatpush.msra.mxu1 %v67_v5  ;;  %v261_v15 = vld [vmem:[%s631_s8 + $0xd8] sm:$0xff]  ;;  %v247_v16 = vld [vmem:[%s631_s8 + $0x68] sm:$0xff]  ;;  %v260_v17 = vld [vmem:[%s631_s8 + $0xd0] sm:$0xff] }
   0xc   :  { %345 = vmatmul.msk.f32.vlgmr.msra.gmra.mxu2 %vm78_vm1, %v63_v6  ;;  %349 = vmatmul.msk.f32.vlgmr.msra.gmra.mxu1 %vm78_vm1, %v63_v6  ;;  %v246_v18 = vld [vmem:[%s631_s8 + $0x60] sm:$0xff]  ;;  %v259_v19 = vld [vmem:[%s631_s8 + $0xc8] sm:$0xff]  ;;  %v245_v20 = vld [vmem:[%s631_s8 + $0x58] sm:$0xff] }
   0xd   :  { %291 = vmatpush.msra.mxu0 %v264_v10  ;;  %270 = vmatpush.msra.mxu3 %v249_v12  ;;  %v258_v21 = vld [vmem:[%s631_s8 + $0xc0] sm:$0xff]  ;;  %v244_v22 = vld [vmem:[%s631_s8 + $0x50] sm:$0xff]  ;;  %v257_v23 = vld [vmem:[%s631_s8 + $0xb8] sm:$0xff] }
   0xe   :  { %v243_v24 = vld [vmem:[%s631_s8 + $0x48] sm:$0xff]  ;;  %v256_v25 = vld [vmem:[%s631_s8 + $0xb0] sm:$0xff]  ;;  %v242_v26 = vld [vmem:[%s631_s8 + $0x40] sm:$0xff] }
   0xf   :  { %292 = vmatpush.msra.mxu0 %v263_v11  ;;  %271 = vmatpush.msra.mxu3 %v248_v14  ;;  %v255_v27 = vld [vmem:[%s631_s8 + $0xa8] sm:$0xff]  ;;  %v193_v28 = vld [vmem:[%s627_s4 + $0x18] sm:$0xff]  ;;  %v254_v30 = vld [vmem:[%s631_s8 + $0xa0] sm:$0xff] }
  0x10   :  { %v241_v29 = vld [vmem:[%s631_s8 + $0x38] sm:$0xff]  ;;  %214 = vmatpush.msrb.mxu2 %v193_v28  ;;  %v192_v31 = vld [vmem:[%s627_s4 + $0x10] sm:$0xff]  ;;  %v239_v34 = vld [vmem:[%s631_s8 + $0x28] sm:$0xff] }
  0x11   :  { %293 = vmatpush.msra.mxu0 %v262_v13  ;;  %272 = vmatpush.msra.mxu3 %v247_v16  ;;  %v240_v32 = vld [vmem:[%s631_s8 + $0x30] sm:$0xff]  ;;  %v253_v33 = vld [vmem:[%s631_s8 + $0x98] sm:$0xff]  ;;  %v72_v36 = vld [vmem:[%s625_s2] sm:$0x3] }
  0x12   :  { %215 = vmatpush.msrb.mxu2 %v192_v31  ;;  %v252_v35 = vld [vmem:[%s631_s8 + $0x90] sm:$0xff]  ;;  %v238_v38 = vld [vmem:[%s631_s8 + $0x20] sm:$0xff]  ;;  %v251_v39 = vld [vmem:[%s631_s8 + $0x88] sm:$0xff]  ;;  %v75_v43 = vperm.slane %v72_v36, 1  ;;  %v74_v54 = vperm.slane %v72_v36, 0 }
  0x13   :  { %294 = vmatpush.msra.mxu0 %v261_v15  ;;  %273 = vmatpush.msra.mxu3 %v246_v18  ;;  %v191_v40 = vld [vmem:[%s627_s4 + $0x8] sm:$0xff]  ;;  %v190_v41 = vld [vmem:[%s627_s4] sm:$0xff]  ;;  %v237_v42 = vld [vmem:[%s631_s8 + $0x18] sm:$0xff] }
  0x14   :  { %346 = vmatmul.msk.f32.gmra.mxu2 %vm78_vm1, %v64_v7  ;;  %350 = vmatmul.msk.f32.gmra.mxu1 %vm78_vm1, %v64_v7  ;;  %v250_v44 = vld [vmem:[%s631_s8 + $0x80] sm:$0xff]  ;;  %v236_v45 = vld [vmem:[%s631_s8 + $0x10] sm:$0xff]  ;;  %v235_v47 = vld [vmem:[%s631_s8 + $0x8] sm:$0xff] }
  0x15   :  { %295 = vmatpush.msra.mxu0 %v260_v17  ;;  %274 = vmatpush.msra.mxu3 %v245_v20  ;;  %v189_v46 = vld [vmem:[%s626_s3] sm:$0x3] }
  0x16   :  { %216 = vmatpush.msrb.mxu2 %v191_v40  ;;  %v234_v50 = vld [vmem:[%s631_s8] sm:$0xff] }
  0x17   :  { %296 = vmatpush.msra.mxu0 %v259_v19  ;;  %275 = vmatpush.msra.mxu3 %v244_v22  ;;  %v357_v40 = vld [vmem:[%s629_s6] ss:$0 sm:$0xff]  ;;  %s353_s6 = sld [smem:[#allocation5 + $0x1]] }
  0x18   :  { %217 = vmatpush.msrb.mxu2 %v190_v41 }
  0x19   :  { %297 = vmatpush.msra.mxu0 %v258_v21  ;;  %276 = vmatpush.msra.mxu3 %v243_v24 }
  0x1b   :  { %298 = vmatpush.msra.mxu0 %v257_v23  ;;  %277 = vmatpush.msra.mxu3 %v242_v26 }
  0x1c   :  { %347 = vmatmul.msk.f32.gmra.mxu2 %vm78_vm1, %v65_v8  ;;  %351 = vmatmul.msk.f32.gmra.mxu1 %vm78_vm1, %v65_v8 }
  0x1d   :  { %299 = vmatpush.msra.mxu0 %v256_v25  ;;  %278 = vmatpush.msra.mxu3 %v241_v29 }
  0x1f   :  { %300 = vmatpush.msra.mxu0 %v255_v27  ;;  %279 = vmatpush.msra.mxu3 %v240_v32 }
  0x21   :  { %301 = vmatpush.msra.mxu0 %v254_v30  ;;  %280 = vmatpush.msra.mxu3 %v239_v34 }
  0x23   :  { %302 = vmatpush.msra.mxu0 %v253_v33  ;;  %281 = vmatpush.msra.mxu3 %v238_v38 }
  0x24   :  { %352 = vmatmul.msk.f32.vlgmr.msrb.gmra.mxu2 %vm198_vm2, %v189_v46 }
  0x25   :  { %303 = vmatpush.msra.mxu0 %v252_v35  ;;  %282 = vmatpush.msra.mxu3 %v237_v42 }
  0x27   :  { %304 = vmatpush.msra.mxu0 %v251_v39  ;;  %283 = vmatpush.msra.mxu3 %v236_v45 }
  0x29   :  { %305 = vmatpush.msra.mxu0 %v250_v44  ;;  %284 = vmatpush.msra.mxu3 %v235_v47 }
  0x2b   :  { %285 = vmatpush.msra.mxu3 %v234_v50 }
  0x89   :  { %v138_v37 = vpop.f32.mrf.mxu1 }
  0x8a   :  { %v139_v48 = vadd.f32 %v138_v37, %v75_v43  ;;  %v355_v37 = vld [vmem:[%s628_s5] ss:$0 sm:$0xff] }
  0x8c   :  { %v148_v53 = vmax.f32 %v139_v48, 0.0  ;;  %v358_v48 = vld [vmem:[%s633_s10] ss:$0 sm:$0xff] }
  0x8f   :  { %v112_v49 = vpop.f32.mrf.mxu2 }
  0x90   :  { %v113_v57 = vadd.f32 %v112_v49, %v74_v54 }
  0x91   :  { %v141_v51 = vpop.f32.mrf.mxu1 }
  0x92   :  { %v142_v52 = vadd.f32 %v141_v51, %v75_v43  ;;  %v147_v1 = vmax.f32 %v113_v57, 0.0  ;;  %v327_v57 = vstv %s353_s6 }
  0x94   :  { %v150_v55 = vmax.f32 %v142_v52, 0.0 }
  0x96   :  { %v161_v56 = vsel %vm88_vm0, %v150_v55, -inf  ;;  %v178_v3 = vsel %vm169_vm3, %v150_v55, -inf  ;;  %v333_v55 = vlaneseq }
  0x97   :  { %v162_v58 = vmax.f32 %v148_v53, %v161_v56  ;;  %v115_v59 = vpop.f32.mrf.mxu2  ;;  %v232_v53 = vstv %s630_s7 }
  0x98   :  { %v116_v60 = vadd.f32 %v115_v59, %v74_v54 }
  0x99   :  { %v163_v61 = vrot.slane %v162_v58, 4  ;;  %v144_v62 = vpop.f32.mrf.mxu1 }
  0x9a   :  { %v149_v63 = vmax.f32 %v116_v60, 0.0  ;;  %v145_v0 = vadd.f32 %v144_v62, %v75_v43  ;;  %v356_v43 = vld [vmem:[%s632_s9] ss:$0 sm:$0xff] }
  0x9b   :  { %v164_v2 = vmax.f32 %v162_v58, %v163_v61  ;;  %v324_v58 = vstv %s323_s20  ;;  %v334_v61 = vand.u32 127, %v333_v55 }
  0x9c   :  { %v153_v4 = vsel %vm88_vm0, %v149_v63, -inf  ;;  %v152_v5 = vmax.f32 %v145_v0, 0.0  ;;  %v170_v17 = vsel %vm169_vm3, %v149_v63, -inf  ;;  %v331_v0 = vstv %s636_s13 }
  0x9d   :  { %v154_v6 = vmax.f32 %v147_v1, %v153_v4  ;;  %v165_v7 = vrot.slane %v164_v2, 2  ;;  %vm335_vm7 = vcmp.eq.s32.totalorder %v334_v61, 0 }
  0x9e   :  { %v179_v8 = vmax.f32 %v178_v3, %v152_v5 }
  0x9f   :  { %v155_v9 = vrot.slane %v154_v6, 4  ;;  %v118_v10 = vpop.f32.mrf.mxu2  ;;  %v166_v16 = vmax.f32 %v164_v2, %v165_v7 }
  0xa0   :  { %v180_v11 = vrot.slane %v179_v8, 4  ;;  %v119_v12 = vadd.f32 %v118_v10, %v74_v54  ;;  %v321_v54 = vstv %s634_s11 }
  0xa1   :  { %v156_v13 = vmax.f32 %v154_v6, %v155_v9  ;;  %v167_v22 = vrot.slane %v166_v16, 1 }
  0xa2   :  { %v181_v14 = vmax.f32 %v179_v8, %v180_v11  ;;  %v151_v15 = vmax.f32 %v119_v12, 0.0 }
  0xa3   :  { %v157_v18 = vrot.slane %v156_v13, 2  ;;  %v168_v28 = vmax.f32 %v166_v16, %v167_v22 }
  0xa4   :  { %v182_v19 = vrot.slane %v181_v14, 2  ;;  %v171_v20 = vmax.f32 %v170_v17, %v151_v15 }
  0xa5   :  { %v158_v26 = vmax.f32 %v156_v13, %v157_v18 }
  0xa6   :  { %v172_v21 = vrot.slane %v171_v20, 4  ;;  %v183_v23 = vmax.f32 %v181_v14, %v182_v19 }
  0xa7   :  { %v159_v31 = vrot.slane %v158_v26, 1  ;;  %v219_v38 = vpop.f32.mrf.mxu2 }
  0xa8   :  { %v173_v24 = vmax.f32 %v171_v20, %v172_v21  ;;  %v184_v25 = vrot.slane %v183_v23, 1  ;;  %v220_v39 = vadd.f32 %v355_v37, %v219_v38 }
  0xa9   :  { %v160_v34 = vmax.f32 %v158_v26, %v159_v31 }
  0xaa   :  { %v174_v27 = vrot.slane %v173_v24, 2  ;;  %v185_v29 = vmax.f32 %v183_v23, %v184_v25  ;;  %v226_v41 = vmul.f32 %v357_v40, %v220_v39 }
  0xac   :  { %v188_v30 = vsel %vm186_vm4, %v168_v28, %v185_v29  ;;  %v175_v32 = vmax.f32 %v173_v24, %v174_v27  ;;  %v228_v42 = vsel %vm227_vm5, %v226_v41, 0.0 }
  0xad   :  { %306 = vmatmul.f32.vlgmr.msra.gmra.mxu0 %v188_v30  ;;  %229 = vadd.xlane.f32.xlu0 %v228_v42 }
  0xae   :  { %v176_v33 = vrot.slane %v175_v32, 1 }
  0xb0   :  { %v177_v35 = vmax.f32 %v175_v32, %v176_v33 }
  0xb2   :  { %v187_v36 = vsel %vm186_vm4, %v160_v34, %v177_v35 }
  0xb3   :  { %286 = vmatmul.f32.vlgmr.msra.gmra.mxu3 %v187_v36 }
 0x120   :  { %v230_v52 = vpop.xlane.xlu0 %229 }
 0x121   :  { %v233_v56 = vadd.f32 %v232_v53, %v230_v52 }
 0x123   :  { %v328_v62 = vmul.f32 %v327_v57, %v233_v56 }
 0x12a   :  { %v307_v46 = vpop.f32.mrf.mxu0 }
 0x136   :  { %v287_v44 = vpop.f32.mrf.mxu3 }
 0x137   :  { %v288_v45 = vadd.f32 %v356_v43, %v287_v44 }
 0x139   :  { %v308_v47 = vadd.f32 %v307_v46, %v288_v45 }
 0x13b   :  { %v310_v49 = vmax.f32 %v308_v47, 0.0 }
 0x13d   :  { %v315_v50 = vmul.f32 %v358_v48, %v310_v49 }
 0x13f   :  { %v317_v51 = vsel %vm316_vm6, %v315_v50, 0.0 }
 0x140   :  { %318 = vadd.xlane.f32.xlu0 %v317_v51 }
 0x1b3   :  { %v319_v59 = vpop.xlane.xlu0 %318 }
 0x1b4   :  { %v322_v60 = vadd.f32 %v321_v54, %v319_v59 }
 0x1b6   :  { %v325_v63 = vmul.f32 %v324_v58, %v322_v60 }
 0x1b8   :  { %v329_v1 = vadd.f32 %v328_v62, %v325_v63 }
 0x1ba   :  { %v332_v2 = vadd.f32 %v331_v0, %v329_v1 }
 0x1bc   :  { %v336_v3 = vsel %vm335_vm7, %v332_v2, %v233_v56 }
 0x1bd   :  { %338 = vst.msk [vmem:[%s637_s14] sm:$0x3] %vm337_vm8, %v336_v3 }
 0x1be   :  { %343 = vsyncpa [#allocation6], 1 }

</bundles_post_ra>
